<compile_context>
chip_gen: v7x
topology: tpu7x:2x2x1
jax: 0.10.0
libtpu: 0.0.40
codegen_flags: <defaults>
</compile_context>

<pallas_src>
import jax
import jax.numpy as jnp
from jax.experimental import pallas as pl
from jax.experimental.pallas import tpu as pltpu

IN_DIM = 80
Z_DIM = 8
BATCH = 8

# (in_dim, out_dim) per layer, one 128-lane block per layer in the param slab.
#   slot 0: encoder L1  80 -> 40
#   slot 1: encoder L2  40 -> 16
#   slot 2: fused head  16 -> 16   (lanes 0:8 = mu, 8:16 = logvar)
#   slot 3: decoder L1   8 -> 16
#   slot 4: decoder L2  16 -> 40
#   slot 5: decoder L3  40 -> 80
_LAYERS = ((80, 40), (40, 16), (16, 16), (8, 16), (16, 40), (40, 80))
_LANE = 128
_SLAB_ROWS = 81          # rows 0:80 = weights, row 80 = bias
_SLAB_COLS = _LANE * len(_LAYERS)   # 768


def ae_word_crosstask_kernel(x_ref, eps_ref, p_ref, out_ref):
    f32 = jnp.float32
    x = x_ref[...]                      # (tb, 80)
    eps = eps_ref[...]                  # (tb, 8)
    tb = x.shape[0]

    def layer(act, slot):
        in_d, out_d = _LAYERS[slot]
        c = _LANE * slot
        w = p_ref[0:in_d, c:c + out_d]          # (in, out), static slice
        b = p_ref[80:81, c:c + out_d]           # (1, out)
        return jnp.dot(act, w, preferred_element_type=f32) + b

    # encoder: 80 -> 40 (ReLU) -> 16
    e1 = jnp.maximum(layer(x, 0), 0.0)
    e2 = layer(e1, 1)

    # fused probabilistic head: one (tb,16)@(16,16) matmul, then lane slices
    head = layer(e2, 2)
    mu = head[:, 0:Z_DIM]
    logvar = head[:, Z_DIM:2 * Z_DIM]
    z = mu + eps * jnp.exp(0.5 * logvar)

    # decoder: 8 -> 16 (ReLU) -> 40 (ReLU) -> 80
    d1 = jnp.maximum(layer(z, 3), 0.0)
    d2 = jnp.maximum(layer(d1, 4), 0.0)
    x_recon = layer(d2, 5)

    # single lane-dense 128-wide store: [x_recon | z | mu | logvar | pad]
    pad = jnp.zeros((tb, _LANE - (IN_DIM + 3 * Z_DIM)), f32)
    out_ref[...] = jnp.concatenate([x_recon, z, mu, logvar, pad], axis=-1)


def init_params(key, z_dim=Z_DIM):
    """PyTorch-style init: U(-1/sqrt(fan_in), 1/sqrt(fan_in)); weights (out,in)."""
    def unif(k, shape, fan_in):
        bound = 1.0 / jnp.sqrt(jnp.float32(fan_in))
        return jax.random.uniform(k, shape, jnp.float32, -bound, bound)

    ks = jax.random.split(key, 16)
    p = {}
    p["w_e1"], p["b_e1"] = unif(ks[0], (40, 80), 80), unif(ks[1], (40,), 80)
    p["w_e2"], p["b_e2"] = unif(ks[2], (16, 40), 40), unif(ks[3], (16,), 40)
    p["w_mu"], p["b_mu"] = unif(ks[4], (z_dim, 16), 16), unif(ks[5], (z_dim,), 16)
    p["w_lv"], p["b_lv"] = unif(ks[6], (z_dim, 16), 16), unif(ks[7], (z_dim,), 16)
    p["w_d1"], p["b_d1"] = unif(ks[8], (16, z_dim), z_dim), unif(ks[9], (16,), z_dim)
    p["w_d2"], p["b_d2"] = unif(ks[10], (40, 16), 16), unif(ks[11], (40,), 16)
    p["w_d3"], p["b_d3"] = unif(ks[12], (80, 40), 40), unif(ks[13], (80,), 40)
    return p


def pack_params(p):
    """One-time packing of all weights/biases into a single (81, 768) f32 slab."""
    slab = jnp.zeros((_SLAB_ROWS, _SLAB_COLS), jnp.float32)

    def put(slab, slot, w, b):
        wt = jnp.asarray(w, jnp.float32).T          # (in, out)
        in_d, out_d = wt.shape
        assert (in_d, out_d) == _LAYERS[slot]
        c = _LANE * slot
        slab = slab.at[0:in_d, c:c + out_d].set(wt)
        slab = slab.at[80, c:c + out_d].set(jnp.asarray(b, jnp.float32))
        return slab

    slab = put(slab, 0, p["w_e1"], p["b_e1"])
    slab = put(slab, 1, p["w_e2"], p["b_e2"])
    # fused mu|logvar head: concat along the output axis (torch layout (out,in))
    w_head = jnp.concatenate([p["w_mu"], p["w_lv"]], axis=0)   # (16, 16)
    b_head = jnp.concatenate([p["b_mu"], p["b_lv"]], axis=0)   # (16,)
    slab = put(slab, 2, w_head, b_head)
    slab = put(slab, 3, p["w_d1"], p["b_d1"])
    slab = put(slab, 4, p["w_d2"], p["b_d2"])
    slab = put(slab, 5, p["w_d3"], p["b_d3"])
    return slab


def ae_word_crosstask_forward(x, eps, slab):
    """Fused forward. Returns (x_recon, z, mu, logvar)."""
    B = x.shape[0]
    # Row tile: large B gets 256-row tiles (weights stay resident via constant
    # index_map); small B runs the whole batch in one grid step.
    tile_b = 256 if (B > 256 and B % 256 == 0) else B

    out = pl.pallas_call(
        ae_word_crosstask_kernel,
        out_shape=jax.ShapeDtypeStruct((B, _LANE), jnp.float32),
        grid_spec=pltpu.PrefetchScalarGridSpec(
            num_scalar_prefetch=0,
            grid=(B // tile_b,),
            in_specs=[
                pl.BlockSpec((tile_b, IN_DIM), lambda i: (i, 0)),
                pl.BlockSpec((tile_b, Z_DIM), lambda i: (i, 0)),
                pl.BlockSpec((_SLAB_ROWS, _SLAB_COLS), lambda i: (0, 0)),
            ],
            out_specs=pl.BlockSpec((tile_b, _LANE), lambda i: (i, 0)),
        ),
        compiler_params=pltpu.CompilerParams(
            dimension_semantics=("parallel",)),
    )(x, eps, slab)

    x_recon = out[:, 0:IN_DIM]
    z = out[:, IN_DIM:IN_DIM + Z_DIM]
    mu = out[:, IN_DIM + Z_DIM:IN_DIM + 2 * Z_DIM]
    logvar = out[:, IN_DIM + 2 * Z_DIM:IN_DIM + 3 * Z_DIM]
    return x_recon, z, mu, logvar


def _reference_forward(x, eps, p):
    """Pure-JAX reference of the PyTorch module (for a correctness check)."""
    def lin(a, w, b):
        return a @ jnp.asarray(w).T + jnp.asarray(b)
    e1 = jnp.maximum(lin(x, p["w_e1"], p["b_e1"]), 0.0)
    e2 = lin(e1, p["w_e2"], p["b_e2"])
    mu = lin(e2, p["w_mu"], p["b_mu"])
    logvar = lin(e2, p["w_lv"], p["b_lv"])
    z = mu + eps * jnp.exp(0.5 * logvar)
    d1 = jnp.maximum(lin(z, p["w_d1"], p["b_d1"]), 0.0)
    d2 = jnp.maximum(lin(d1, p["w_d2"], p["b_d2"]), 0.0)
    x_recon = lin(d2, p["w_d3"], p["b_d3"])
    return x_recon, z, mu, logvar


if __name__ == "__main__":
    key = jax.random.PRNGKey(0)
    k_param, k_x, k_eps = jax.random.split(key, 3)

    params = init_params(k_param, z_dim=Z_DIM)
    slab = jax.block_until_ready(pack_params(params))   # packed ONCE, reused every call

    x = jax.random.normal(k_x, (BATCH, IN_DIM), jnp.float32)
    eps = jax.random.normal(k_eps, (BATCH, Z_DIM), jnp.float32)

    fwd = jax.jit(ae_word_crosstask_forward)
    x_recon, z, mu, logvar = fwd(x, eps, slab)
    jax.block_until_ready((x_recon, z, mu, logvar))

    assert x_recon.shape == (BATCH, IN_DIM)
    assert z.shape == (BATCH, Z_DIM)
    assert mu.shape == (BATCH, Z_DIM)
    assert logvar.shape == (BATCH, Z_DIM)
    assert bool(jnp.all(jnp.isfinite(x_recon)))

    # soft numerical check against the plain-JAX reference (loose tolerance for
    # MXU accumulation differences)
    rx, rz, rmu, rlv = _reference_forward(x, eps, params)
    assert bool(jnp.allclose(x_recon, rx, rtol=5e-2, atol=5e-2))
    assert bool(jnp.allclose(z, rz, rtol=5e-2, atol=5e-2))
    assert bool(jnp.allclose(mu, rmu, rtol=5e-2, atol=5e-2))
    assert bool(jnp.allclose(logvar, rlv, rtol=5e-2, atol=5e-2))

    print("KERNEL_OK")
</pallas_src>

<mosaic_0001>
module attributes {stable_mosaic.version = 11 : i64} {
  func.func @ae_word_crosstask_kernel(%arg0: i32, %arg1: memref<8x80xf32, #tpu.memory_space<vmem>>, %arg2: memref<8x8xf32, #tpu.memory_space<vmem>>, %arg3: memref<81x768xf32, #tpu.memory_space<vmem>>, %arg4: memref<8x128xf32, #tpu.memory_space<vmem>>) attributes {dimension_semantics = [#tpu.dimension_semantics<parallel>], iteration_bounds = array<i64: 1>, scalar_prefetch = 0 : i64, scratch_operands = 0 : i64, tpu.core_type = #tpu.core_type<tc>, window_params = [{transform_indices = @transform_0, window_bounds = array<i64: 8, 80>}, {transform_indices = @transform_1, window_bounds = array<i64: 8, 8>}, {pipeline_mode = #tpu.pipeline_mode<synchronous>, transform_indices = @transform_2, window_bounds = array<i64: 81, 768>}, {transform_indices = @transform_3, window_bounds = array<i64: 8, 128>}]} {
    %c0 = arith.constant 0 : index
    %c0_0 = arith.constant 0 : index
    %0 = vector.load %arg1[%c0, %c0_0] : memref<8x80xf32, #tpu.memory_space<vmem>>, vector<8x80xf32>
    %c0_1 = arith.constant 0 : index
    %c0_2 = arith.constant 0 : index
    %1 = vector.load %arg2[%c0_1, %c0_2] : memref<8x8xf32, #tpu.memory_space<vmem>>, vector<8x8xf32>
    %c0_3 = arith.constant 0 : index
    %c0_4 = arith.constant 0 : index
    %2 = vector.load %arg3[%c0_3, %c0_4] : memref<81x768xf32, #tpu.memory_space<vmem>>, vector<80x40xf32>
    %c80 = arith.constant 80 : index
    %c0_5 = arith.constant 0 : index
    %3 = vector.load %arg3[%c80, %c0_5] : memref<81x768xf32, #tpu.memory_space<vmem>>, vector<1x40xf32>
    %cst = arith.constant dense<0.000000e+00> : vector<8x40xf32>
    %4 = tpu.matmul %0, %2, %cst {dimension_numbers = #tpu.dot_dimension_numbers<[1], [0], [0], [1], [0, 0, 1, 1], [], []>} : vector<8x80xf32>, vector<80x40xf32>, vector<8x40xf32> -> vector<8x40xf32>
    %5 = vector.broadcast %3 : vector<1x40xf32> to vector<8x40xf32>
    %6 = arith.addf %4, %5 : vector<8x40xf32>
    %cst_6 = arith.constant 0.000000e+00 : f32
    %7 = vector.broadcast %cst_6 : f32 to vector<8x40xf32>
    %8 = arith.maximumf %6, %7 : vector<8x40xf32>
    %c0_7 = arith.constant 0 : index
    %c128 = arith.constant 128 : index
    %9 = vector.load %arg3[%c0_7, %c128] : memref<81x768xf32, #tpu.memory_space<vmem>>, vector<40x16xf32>
    %c80_8 = arith.constant 80 : index
    %c128_9 = arith.constant 128 : index
    %10 = vector.load %arg3[%c80_8, %c128_9] : memref<81x768xf32, #tpu.memory_space<vmem>>, vector<1x16xf32>
    %cst_10 = arith.constant dense<0.000000e+00> : vector<8x16xf32>
    %11 = tpu.matmul %8, %9, %cst_10 {dimension_numbers = #tpu.dot_dimension_numbers<[1], [0], [0], [1], [0, 0, 1, 1], [], []>} : vector<8x40xf32>, vector<40x16xf32>, vector<8x16xf32> -> vector<8x16xf32>
    %12 = vector.broadcast %10 : vector<1x16xf32> to vector<8x16xf32>
    %13 = arith.addf %11, %12 : vector<8x16xf32>
    %c0_11 = arith.constant 0 : index
    %c256 = arith.constant 256 : index
    %14 = vector.load %arg3[%c0_11, %c256] : memref<81x768xf32, #tpu.memory_space<vmem>>, vector<16x16xf32>
    %c80_12 = arith.constant 80 : index
    %c256_13 = arith.constant 256 : index
    %15 = vector.load %arg3[%c80_12, %c256_13] : memref<81x768xf32, #tpu.memory_space<vmem>>, vector<1x16xf32>
    %cst_14 = arith.constant dense<0.000000e+00> : vector<8x16xf32>
    %16 = tpu.matmul %13, %14, %cst_14 {dimension_numbers = #tpu.dot_dimension_numbers<[1], [0], [0], [1], [0, 0, 1, 1], [], []>} : vector<8x16xf32>, vector<16x16xf32>, vector<8x16xf32> -> vector<8x16xf32>
    %17 = vector.broadcast %15 : vector<1x16xf32> to vector<8x16xf32>
    %18 = arith.addf %16, %17 : vector<8x16xf32>
    %19 = vector.extract_strided_slice %18 {offsets = [0, 0], sizes = [8, 8], strides = [1, 1]} : vector<8x16xf32> to vector<8x8xf32>
    %20 = vector.extract_strided_slice %18 {offsets = [0, 8], sizes = [8, 8], strides = [1, 1]} : vector<8x16xf32> to vector<8x8xf32>
    %cst_15 = arith.constant 5.000000e-01 : f32
    %21 = vector.broadcast %cst_15 : f32 to vector<8x8xf32>
    %22 = arith.mulf %21, %20 : vector<8x8xf32>
    %23 = math.exp %22 : vector<8x8xf32>
    %24 = arith.mulf %1, %23 : vector<8x8xf32>
    %25 = arith.addf %19, %24 : vector<8x8xf32>
    %c0_16 = arith.constant 0 : index
    %c384 = arith.constant 384 : index
    %26 = vector.load %arg3[%c0_16, %c384] : memref<81x768xf32, #tpu.memory_space<vmem>>, vector<8x16xf32>
    %c80_17 = arith.constant 80 : index
    %c384_18 = arith.constant 384 : index
    %27 = vector.load %arg3[%c80_17, %c384_18] : memref<81x768xf32, #tpu.memory_space<vmem>>, vector<1x16xf32>
    %cst_19 = arith.constant dense<0.000000e+00> : vector<8x16xf32>
    %28 = tpu.matmul %25, %26, %cst_19 {dimension_numbers = #tpu.dot_dimension_numbers<[1], [0], [0], [1], [0, 0, 1, 1], [], []>} : vector<8x8xf32>, vector<8x16xf32>, vector<8x16xf32> -> vector<8x16xf32>
    %29 = vector.broadcast %27 : vector<1x16xf32> to vector<8x16xf32>
    %30 = arith.addf %28, %29 : vector<8x16xf32>
    %cst_20 = arith.constant 0.000000e+00 : f32
    %31 = vector.broadcast %cst_20 : f32 to vector<8x16xf32>
    %32 = arith.maximumf %30, %31 : vector<8x16xf32>
    %c0_21 = arith.constant 0 : index
    %c512 = arith.constant 512 : index
    %33 = vector.load %arg3[%c0_21, %c512] : memref<81x768xf32, #tpu.memory_space<vmem>>, vector<16x40xf32>
    %c80_22 = arith.constant 80 : index
    %c512_23 = arith.constant 512 : index
    %34 = vector.load %arg3[%c80_22, %c512_23] : memref<81x768xf32, #tpu.memory_space<vmem>>, vector<1x40xf32>
    %cst_24 = arith.constant dense<0.000000e+00> : vector<8x40xf32>
    %35 = tpu.matmul %32, %33, %cst_24 {dimension_numbers = #tpu.dot_dimension_numbers<[1], [0], [0], [1], [0, 0, 1, 1], [], []>} : vector<8x16xf32>, vector<16x40xf32>, vector<8x40xf32> -> vector<8x40xf32>
    %36 = vector.broadcast %34 : vector<1x40xf32> to vector<8x40xf32>
    %37 = arith.addf %35, %36 : vector<8x40xf32>
    %cst_25 = arith.constant 0.000000e+00 : f32
    %38 = vector.broadcast %cst_25 : f32 to vector<8x40xf32>
    %39 = arith.maximumf %37, %38 : vector<8x40xf32>
    %c0_26 = arith.constant 0 : index
    %c640 = arith.constant 640 : index
    %40 = vector.load %arg3[%c0_26, %c640] : memref<81x768xf32, #tpu.memory_space<vmem>>, vector<40x80xf32>
    %c80_27 = arith.constant 80 : index
    %c640_28 = arith.constant 640 : index
    %41 = vector.load %arg3[%c80_27, %c640_28] : memref<81x768xf32, #tpu.memory_space<vmem>>, vector<1x80xf32>
    %cst_29 = arith.constant dense<0.000000e+00> : vector<8x80xf32>
    %42 = tpu.matmul %39, %40, %cst_29 {dimension_numbers = #tpu.dot_dimension_numbers<[1], [0], [0], [1], [0, 0, 1, 1], [], []>} : vector<8x40xf32>, vector<40x80xf32>, vector<8x80xf32> -> vector<8x80xf32>
    %43 = vector.broadcast %41 : vector<1x80xf32> to vector<8x80xf32>
    %44 = arith.addf %42, %43 : vector<8x80xf32>
    %cst_30 = arith.constant 0.000000e+00 : f32
    %45 = vector.broadcast %cst_30 : f32 to vector<8x24xf32>
    %46 = tpu.concatenate %44, %25, %19, %20, %45 in 1 : vector<8x80xf32>, vector<8x8xf32>, vector<8x8xf32>, vector<8x8xf32>, vector<8x24xf32> -> vector<8x128xf32>
    %c0_31 = arith.constant 0 : index
    %c0_32 = arith.constant 0 : index
    %47 = vector.load %arg4[%c0_31, %c0_32] : memref<8x128xf32, #tpu.memory_space<vmem>>, vector<8x128xf32>
    tpu.vector_store %arg4[%c0_31, %c0_32], %46 {strides = array<i32>} : memref<8x128xf32, #tpu.memory_space<vmem>>, vector<8x128xf32>,
    return
  }
  func.func @transform_0(%arg0: i32) -> (i32, i32) {
    %c0_i32 = arith.constant 0 : i32
    %c0_i32_0 = arith.constant 0 : i32
    return %arg0, %c0_i32 : i32, i32
  }
  func.func @transform_1(%arg0: i32) -> (i32, i32) {
    %c0_i32 = arith.constant 0 : i32
    %c0_i32_0 = arith.constant 0 : i32
    return %arg0, %c0_i32 : i32, i32
  }
  func.func @transform_2(%arg0: i32) -> (i32, i32) {
    %c0_i32 = arith.constant 0 : i32
    %c0_i32_0 = arith.constant 0 : i32
    %c0_i32_1 = arith.constant 0 : i32
    return %c0_i32, %c0_i32_0 : i32, i32
  }
  func.func @transform_3(%arg0: i32) -> (i32, i32) {
    %c0_i32 = arith.constant 0 : i32
    %c0_i32_0 = arith.constant 0 : i32
    return %arg0, %c0_i32 : i32, i32
  }
}

</mosaic_0001>

<bundles_post_ra>
// kernel: ae_word_crosstask_forward.1
= control target key start
LH: loop header
LB: loop body
LE: loop exit
PB: predicated region body
PF: predicated region fallthrough
CT: control target
= control target key end

     0   :  { %8 = vsyncpa [#allocation3], 0  ;;  %s882_s0 = inlined_call_operand.hbm [shape: f32[8,80], index: 0, kind: input, shape index: {}]   ;;  %s883_s1 = inlined_call_operand.hbm [shape: f32[8,8], index: 1, kind: input, shape index: {}]   ;;  %s884_s2 = inlined_call_operand.hbm [shape: f32[81,768], index: 2, kind: input, shape index: {}]   ;;  %s885_s3 = inlined_call_operand.vmem [shape: f32[8,128], index: 3, kind: output, shape index: {}]  }
   0x1   :  { %9 = vsyncpa [#allocation5], 0  ;;  %s780_s12 = smov [#allocation4]   ;;  %s781_s14 = smov [#allocation2]  }
   0x2   :  { %s26_s13 = sshll.u32 %s780_s12, 4  ;;  %s16_s15 = sshll.u32 %s781_s14, 4  ;;  %s27_s13 = int_to_ptr.vmem [resolvable:$true] %s26_s13  ;;  %s17_s15 = int_to_ptr.vmem [resolvable:$true] %s16_s15 }
   0x3   :  { %s710_s18 = scalar_lea.hbm %s883_s1, 128 }
   0x4   :  { %p711_p0 = scmp.ne.s32.totalorder %s883_s1, %s710_s18  ;;  %p714_p1 = scmp.lt.u32.totalorder %s710_s18, %s883_s1 }
   0x6   :  { %p716_p2 = pnand %p714_p1, %p711_p0 }
   0x8   :  { %719 = shalt.err (!%p716_p2)
}
   0x9   :  { %s720_s23 = scalar_lea.vmem %s27_s13, 128  ;;  %p725_p4 = scmp.lt.s32.totalorder %s27_s13, %s27_s13 }
   0xa   :  { %p721_p3 = scmp.ne.s32.totalorder %s27_s13, %s720_s23  ;;  %p726_p5 = scmp.lt.s32.totalorder %s720_s23, %s720_s23 }
   0xc   :  { %p727_p6 = por %p726_p5, %p725_p4 }
   0xe   :  { %p728_p7 = pnand %p727_p6, %p721_p3 }
  0x10   :  { %731 = shalt.err (!%p728_p7)
}
  0x11   :  { %29 = dma.hbm_to_vmem [thread:$0]  %s883_s1, 128, %s27_s13, [#allocation5]  }
  0x12   :  { %s732_s28 = scalar_lea.hbm %s882_s0, 128 }
  0x13   :  { %p733_p8 = scmp.ne.s32.totalorder %s882_s0, %s732_s28  ;;  %p736_p9 = scmp.lt.u32.totalorder %s732_s28, %s882_s0 }
  0x15   :  { %p738_p10 = pnand %p736_p9, %p733_p8 }
  0x17   :  { %741 = shalt.err (!%p738_p10)
}
  0x18   :  { %s742_s6 = scalar_lea.vmem %s17_s15, 128  ;;  %p747_p12 = scmp.lt.s32.totalorder %s17_s15, %s17_s15 }
  0x19   :  { %p743_p11 = scmp.ne.s32.totalorder %s17_s15, %s742_s6  ;;  %p748_p13 = scmp.lt.s32.totalorder %s742_s6, %s742_s6 }
  0x1b   :  { %p749_p0 = por %p748_p13, %p747_p12 }
  0x1d   :  { %p750_p1 = pnand %p749_p0, %p743_p11 }
  0x1f   :  { %753 = shalt.err (!%p750_p1)
}
  0x20   :  { %19 = dma.hbm_to_vmem [thread:$0]  %s882_s0, 128, %s17_s15, [#allocation3]  }
  0x21   :  { %s782_s8 = smov [#allocation6]   ;;  %s754_s12 = scalar_lea.hbm %s884_s2, 8448 }
  0x22   :  { %s35_s9 = sshll.u32 %s782_s8, 4  ;;  %p755_p2 = scmp.ne.s32.totalorder %s884_s2, %s754_s12  ;;  %s36_s9 = int_to_ptr.vmem [resolvable:$true] %s35_s9 }
  0x23   :  { %p758_p3 = scmp.lt.u32.totalorder %s754_s12, %s884_s2 }
  0x25   :  { %p760_p4 = pnand %p758_p3, %p755_p2 }
  0x27   :  { %763 = shalt.err (!%p760_p4)
}
  0x28   :  { %s764_s18 = scalar_lea.vmem %s36_s9, 8448  ;;  %p769_p6 = scmp.lt.s32.totalorder %s36_s9, %s36_s9 }
  0x29   :  { %p765_p5 = scmp.ne.s32.totalorder %s36_s9, %s764_s18  ;;  %p770_p7 = scmp.lt.s32.totalorder %s764_s18, %s764_s18 }
  0x2b   :  { %p771_p8 = por %p770_p7, %p769_p6 }
  0x2d   :  { %p772_p9 = pnand %p771_p8, %p765_p5 }
  0x2f   :  { %775 = shalt.err (!%p772_p9)
}
  0x30   :  { %s783_s0 = smov 768   ;;  %s784_s15 = smov 48  }
  0x31   :  { %41 = dma.hbm_to_vmem [thread:$0]  %s884_s2, 8448, %s36_s9, [#allocation5], %s783_s0, %s783_s0, %s784_s15  }
  0x32   :  { %776 = dma.done.wait [#allocation3], 128  }
  0x33   :  { %777 = vsyncadd [#allocation3], 4294967168 }
  0x34   :  { %778 = dma.done.wait [#allocation5], 8576  }
  0x35   :  { %779 = vsyncadd [#allocation5], 4294958720  ;;  %v785_v0 = vmov 0.0|0.0   ;;  %vm786_vm0 = vmmov 0   ;;  %v787_v1 = vmov 0.0   ;;  %v53_v2 = vld [vmem:[#allocation6] sm:$0xff] }
  0x36   :  { %664 = vmatprep.subr.bf16.mxu0 %v785_v0  ;;  %616 = vmatprep.mubr.msk.f32.mxu0 %vm786_vm0, %v787_v1  ;;  %v54_v3 = vld [vmem:[#allocation6 + $0x30] sm:$0xff]  ;;  %v55_v4 = vld [vmem:[#allocation6 + $0x60] sm:$0xff]  ;;  %v139_v8 = vld [vmem:[#allocation6 + $0x8] sm:$0xff]  ;;  %vm64_vm1 = vcmask 654336   ;;  %vm145_vm2 = vcmask 326656   ;;  %vm222_vm3 = vcmask 130048  }
  0x37   :  { %679 = vmatprep.subr.bf16.mxu1 %v785_v0  ;;  %629 = vmatprep.mubr.msk.f32.mxu1 %vm786_vm0, %v787_v1  ;;  %v665_v5 = vpack.c.bf16 %v54_v3, %v53_v2  ;;  %v56_v6 = vld [vmem:[#allocation6 + $0x90] sm:$0xff]  ;;  %v57_v9 = vld [vmem:[#allocation6 + $0xc0] sm:$0xff]  ;;  %v140_v11 = vld [vmem:[#allocation6 + $0x38] sm:$0xff]  ;;  %s788_s2 = smov 88   ;;  %s789_s21 = smov 120   ;;  %vm307_vm4 = vcmask 64512  }
  0x38   :  { %v668_v7 = vpack.c.bf16 %v56_v6, %v55_v4  ;;  %v58_v10 = vld [vmem:[#allocation6 + $0xf0] sm:$0xff]  ;;  %v680_v12 = vpack.c.bf16 %v140_v11, %v139_v8  ;;  %v59_v14 = vld [vmem:[#allocation6 + $0x120] sm:$0xff]  ;;  %v141_v21 = vld [vmem:[#allocation6 + $0x68] sm:$0xff]  ;;  %s790_s22 = smov 80   ;;  %vm546_vm5 = vcmask 719872   ;;  %vm548_vm6 = vcmask 785408  }
  0x39   :  { %666 = vmatpush3.bf16.msra.mxu0 %v665_v5  ;;  %v671_v13 = vpack.c.bf16 %v58_v10, %v57_v9  ;;  %v60_v15 = vld [vmem:[#allocation6 + $0x150] sm:$0xff]  ;;  %v61_v17 = vld [vmem:[#allocation6 + $0x180] sm:$0xff]  ;;  %v142_v22 = vld [vmem:[#allocation6 + $0x98] sm:$0xff]  ;;  %vm550_vm7 = vcmask 850944  }
  0x3a   :  { %667 = vmatprep.subr.bf16.mxu0 %v785_v0  ;;  %681 = vmatpush3.bf16.msra.mxu1 %v680_v12  ;;  %v674_v16 = vpack.c.bf16 %v60_v15, %v59_v14  ;;  %v62_v18 = vld [vmem:[#allocation6 + $0x1b0] sm:$0xff]  ;;  %v683_v23 = vpack.c.bf16 %v142_v22, %v141_v21  ;;  %v143_v24 = vld [vmem:[#allocation6 + $0xc8] sm:$0xff]  ;;  %v63_v25 = vld [vmem:[#allocation6 + $0x1e0] ss:$0 sm:$0xff] }
  0x3b   :  { %682 = vmatprep.subr.bf16.mxu1 %v785_v0  ;;  %v677_v19 = vpack.c.bf16 %v62_v18, %v61_v17  ;;  %v51_v20 = vld [vmem:[#allocation2] sm:$0xff]  ;;  %v220_v27 = vld [vmem:[#allocation6 + $0x40] sm:$0xff]  ;;  %v144_v33 = vld [vmem:[#allocation6 + $0x1e8] ss:$0 sm:$0xff] }
  0x3c   :  { %v219_v26 = vld [vmem:[#allocation6 + $0x10] sm:$0xff]  ;;  %v305_v43 = vld [vmem:[#allocation6 + $0x18] sm:$0xff]  ;;  %v382_v49 = vld [vmem:[#allocation6 + $0x20] sm:$0xff] }
  0x3d   :  { %669 = vmatpush3.bf16.msra.mxu0 %v668_v7  ;;  %v686_v31 = vpack.c.bf16 %v220_v27, %v219_v26  ;;  %v221_v37 = vld [vmem:[#allocation6 + $0x1f0] ss:$0 sm:$0xff]  ;;  %v52_v45 = vld [vmem:[#allocation4] sm:$0xff]  ;;  %v459_v52 = vld [vmem:[#allocation6 + $0x28] sm:$0xff] }
  0x3e   :  { %670 = vmatprep.subr.bf16.mxu0 %v785_v0  ;;  %684 = vmatpush3.bf16.msra.mxu1 %v683_v23  ;;  %v383_v50 = vld [vmem:[#allocation6 + $0x50] sm:$0xff]  ;;  %v460_v53 = vld [vmem:[#allocation6 + $0x58] sm:$0xff]  ;;  %v461_v60 = vld [vmem:[#allocation6 + $0x88] sm:$0xff] }
  0x3f   :  { %627 = vmatprep.subr.mxu1 %v787_v1  ;;  %v689_v51 = vpack.c.bf16 %v383_v50, %v382_v49  ;;  %v692_v54 = vpack.c.bf16 %v460_v53, %v459_v52  ;;  %v306_v55 = vld [vmem:[#allocation6 + $0x1f8] ss:$0 sm:$0xff]  ;;  %v463_v63 = vld [vmem:[#allocation6 + $0xe8] sm:$0xff]  ;;  %v384_v2 = vld [vmem:[#allocation6 + $0x200] ss:$0 sm:$0xff] }
  0x40   :  { %v462_v61 = vld [vmem:[#allocation6 + $0xb8] sm:$0xff]  ;;  %v464_v6 = vld [vmem:[#allocation6 + $0x208] ss:$0 sm:$0xff] }
  0x41   :  { %672 = vmatpush3.bf16.msra.mxu0 %v671_v13  ;;  %v695_v62 = vpack.c.bf16 %v462_v61, %v461_v60 }
  0x42   :  { %673 = vmatprep.subr.bf16.mxu0 %v785_v0  ;;  %628 = vmatpush3.msra.mxu1 %v143_v24 }
  0x43   :  { %685 = vmatprep.subr.bf16.mxu1 %v785_v0 }
  0x45   :  { %675 = vmatpush3.bf16.msra.mxu0 %v674_v16 }
  0x46   :  { %676 = vmatprep.subr.bf16.mxu0 %v785_v0 }
  0x49   :  { %678 = vmatpush3.bf16.msra.mxu0 %v677_v19 }
  0x4a   :  { %691 = vmatprep.subr.bf16.mxu0 %v785_v0 }
  0x4c   :  { %617 = vmatmul.mubr.msk.f32.vlgmr.msra.gmra.mrb[0].mxu0 %vm64_vm1, %v51_v20 }
  0x4d   :  { %661 = vmatprep.mubr.msk.f32.mxu0 %vm786_vm0, %v787_v1  ;;  %693 = vmatpush3.bf16.msra.mxu0 %v692_v54 }
  0x4e   :  { %694 = vmatprep.subr.bf16.mxu0 %v785_v0 }
  0x51   :  { %696 = vmatpush3.bf16.msra.mxu0 %v695_v62 }
  0x52   :  { %659 = vmatprep.subr.mxu0 %v787_v1 }
  0x55   :  { %660 = vmatpush3.msra.mxu0 %v463_v63 }
 0x11f   :  { %v134_v28 = vpop.f32.mrb[0].mxu0 }
 0x120   :  { %v135_v29 = vadd.f32 %v134_v28, %v63_v25  ;;  %v618_v30 = vpop.f32.mrb[1].mxu0 }
 0x122   :  { %v138_v32 = vmax.f32 %v135_v29, 0.0 }
 0x124   :  { %630 = vmatmul.mubr.msk.f32.vlgmr.msra.gmra.mrb[0].mxu1 %vm145_vm2, %v138_v32 }
 0x125   :  { %687 = vmatpush3.bf16.msra.mxu1 %v686_v31  ;;  %636 = vmatprep.mubr.msk.f32.mxu1 %vm786_vm0, %v787_v1 }
 0x126   :  { %639 = vmatprep.subr.mxu1 %v787_v1 }
 0x1f7   :  { %v215_v34 = vpop.f32.mrb[0].mxu1 }
 0x1f8   :  { %v216_v35 = vadd.f32 %v215_v34, %v144_v33  ;;  %v631_v36 = vpop.f32.mrb[1].mxu1 }
 0x1fa   :  { %637 = vmatmul.mubr.msk.f32.vlgmr.msra.gmra.mrb[2].mxu1 %vm222_vm3, %v216_v35 }
 0x1fb   :  { %641 = vmatprep.mubr.msk.f32.mxu1 %vm786_vm0, %v787_v1  ;;  %640 = vmatpush3.msra.mxu1 %v305_v43 }
 0x1fc   :  { %688 = vmatprep.subr.bf16.mxu1 %v785_v0 }
 0x2cd   :  { %v292_v38 = vpop.f32.mrb[2].mxu1 }
 0x2ce   :  { %v293_v39 = vadd.f32 %v292_v38, %v221_v37  ;;  %v638_v40 = vpop.f32.mrb[3].mxu1 }
 0x2d0   :  { %v296_v41 = vmul.f32 0.5, %v293_v39  ;;  %542 = vrot.lane.b32.xlu1 %v293_v39, %s788_s2 }
 0x2d2   :  { %v297_v42 = vmul.f32 1.442695, %v296_v41 }
 0x2d4   :  { %708 = vpow2.f32 %v297_v42 }
 0x2de   :  { %v709_v44 = vpop.eup %708 }
 0x2df   :  { %300 = vrot.lane.b32.xlu0 %v709_v44, %s789_s21 }
 0x342   :  { %v543_v11 = vpop.permute.xlu1 %542 }
 0x351   :  { %v301_v46 = vpop.permute.xlu0 %300 }
 0x352   :  { %v303_v47 = vmul.f32 %v301_v46, %v52_v45 }
 0x354   :  { %v304_v48 = vadd.f32 %v303_v47, %v293_v39 }
 0x356   :  { %538 = vrot.lane.b32.xlu0 %v304_v48, %s790_s22  ;;  %642 = vmatmul.mubr.msk.f32.vlgmr.msra.gmra.mrb[4].mxu1 %vm307_vm4, %v304_v48 }
 0x357   :  { %648 = vmatprep.mubr.msk.f32.mxu1 %vm786_vm0, %v787_v1  ;;  %690 = vmatpush3.bf16.msra.mxu1 %v689_v51 }
 0x3c8   :  { %v539_v10 = vpop.permute.xlu0 %538 }
 0x429   :  { %v377_v56 = vpop.f32.mrb[4].mxu1 }
 0x42a   :  { %v378_v57 = vadd.f32 %v377_v56, %v306_v55  ;;  %v643_v58 = vpop.f32.mrb[5].mxu1 }
 0x42c   :  { %v381_v59 = vmax.f32 %v378_v57, 0.0 }
 0x42e   :  { %649 = vmatmul.mubr.msk.f32.vlgmr.msra.gmra.mrb[6].mxu1 %vm222_vm3, %v381_v59 }
 0x501   :  { %v454_v3 = vpop.f32.mrb[6].mxu1 }
 0x502   :  { %v455_v4 = vadd.f32 %v454_v3, %v384_v2  ;;  %v650_v5 = vpop.f32.mrb[7].mxu1 }
 0x504   :  { %v458_v0 = vmax.f32 %v455_v4, 0.0 }
 0x506   :  { %662 = vmatmul.mubr.msk.f32.vlgmr.msra.gmra.mrb[2].mxu0 %vm145_vm2, %v458_v0 }
 0x5d9   :  { %v534_v7 = vpop.f32.mrb[2].mxu0 }
 0x5da   :  { %v535_v8 = vadd.f32 %v534_v7, %v464_v6  ;;  %v663_v9 = vpop.f32.mrb[3].mxu0 }
 0x5dc   :  { %v545_v12 = vsel %vm64_vm1, %v535_v8, %v539_v10 }
 0x5dd   :  { %v547_v1 = vsel %vm546_vm5, %v545_v12, %v543_v11 }
 0x5de   :  { %v549_v13 = vsel %vm548_vm6, %v547_v1, %v543_v11 }
 0x5df   :  { %v551_v14 = vsel %vm550_vm7, %v549_v13, 0.0 }
 0x5e0   :  { %552 = vst [vmem:[%s885_s3] sm:$0xff] %v551_v14 }
 0x5e1   :  { %557 = vsyncpa [#allocation3], 1 }
 0x5e2   :  { %558 = vsyncpa [#allocation5], 1 }

</bundles_post_ra>
